<compile_context>
chip_gen: v7x
topology: tpu7x:2x2x1
jax: 0.10.0
libtpu: 0.0.40
codegen_flags: <defaults>
</compile_context>

<pallas_src>
import functools

import jax
import jax.numpy as jnp
from jax.experimental import pallas as pl
from jax.experimental.pallas import tpu as pltpu

_EPS = 1e-12              # torch.nn.functional.normalize default eps
_EPS2 = _EPS * _EPS       # rsqrt(max(sumsq, eps^2)) == 1 / max(norm, eps)
_NEG_BIG = -1e30          # finite "-inf" for masked lanes (exp -> 0 exactly)


def _contrast_all_kernel(qs_ref, queue_ref, s_ref, m_ref, *,
                         inv_T, K, tk, use_online_max):
    """One grid step = one (C, tk) queue tile for one K-split ("core") slice.

    Outputs (accumulated in-place across the arbitrary axis, one block per core):
      s_ref: (1, N, 1) partial sum of exp(logit - m) over this core's columns
      m_ref: (1, N, 1) the shift m used (constant 1/T, or running max)
    """
    c = pl.program_id(0)                    # parallel K-split index
    kb = pl.program_id(1)                   # tile index within this split
    kb_global = c * pl.num_programs(1) + kb  # un-clamped global tile index

    @pl.when(kb == 0)
    def _init():
        s_ref[...] = jnp.zeros(s_ref.shape, jnp.float32)
        init_m = -inv_T if use_online_max else inv_T
        m_ref[...] = jnp.full(m_ref.shape, init_m, jnp.float32)

    # ---- streamed raw (un-normalized) queue tile -------------------------
    qt = queue_ref[...].astype(jnp.float32)                    # (C, tk)
    col_sumsq = jnp.sum(qt * qt, axis=0, keepdims=True)        # (1, tk)
    col_scale = jax.lax.rsqrt(jnp.maximum(col_sumsq, _EPS2))   # 1/max(||col||, eps)

    # (N, C) @ (C, tk) on the MXU; 1/(||q|| T) already folded into qs.
    raw = jnp.dot(qs_ref[...], qt, preferred_element_type=jnp.float32)
    ln = raw * col_scale                                        # logits / T

    # Mask lanes past the true K (ragged tail tile and fully-clamped tiles).
    col = kb_global * tk + jax.lax.broadcasted_iota(jnp.int32, ln.shape, 1)
    ln = jnp.where(col < K, ln, _NEG_BIG)

    if use_online_max:
        m_prev = m_ref[0]                                       # (N, 1)
        m_new = jnp.maximum(m_prev, jnp.max(ln, axis=1, keepdims=True))
        s_ref[0] = (s_ref[0] * jnp.exp(m_prev - m_new)
                    + jnp.sum(jnp.exp(ln - m_new), axis=1, keepdims=True))
        m_ref[0] = m_new
    else:
        # All logits are bounded by 1/T (normalized rows & columns): constant shift.
        s_ref[0] = s_ref[0] + jnp.sum(jnp.exp(ln - inv_T), axis=1, keepdims=True)


def _auto_tile_k(N, C, K, queue_itemsize, budget_bytes):
    """Largest tk fitting the VMEM budget: double-buffered (C, tk) queue tile plus
    ~6 live (N, tk) f32 temporaries (matmul result, scaled logits, exp, mask, ...)."""
    bytes_per_col = 2 * C * queue_itemsize + 6 * N * 4
    return max(128, int(budget_bytes // max(bytes_per_col, 1)))


def _normalize_tile_k(tk, K):
    """tk must be a multiple of 128 or equal the full K extent."""
    tk = int(min(tk, K))
    if tk < K:
        tk = max(128, (tk // 128) * 128)
        tk = min(tk, K)           # if K itself is < 128 this collapses to full-K
    return tk


def contrast_all_loss(q_outs, k, queue, T=0.07, *, tile_k=None,
                      tile_budget_bytes=24 << 20, num_k_splits=2):
    """JAX/Pallas equivalent of ContrastAllCalculator(T, metric).forward."""
    q = q_outs[0] if isinstance(q_outs, tuple) else q_outs
    if queue.ndim > 2:
        queue = queue[-1, :, :]

    N, C = q.shape
    Cq, K = queue.shape
    assert Cq == C, (Cq, C)
    inv_T = float(1.0 / T)

    # ---- XLA-side prologue: cheap O(N*C) work hoisted out of the kernel ----
    q32 = q.astype(jnp.float32)
    k32 = k.astype(jnp.float32)
    qn = q32 * jax.lax.rsqrt(
        jnp.maximum(jnp.sum(q32 * q32, axis=1, keepdims=True), _EPS2))
    kn = k32 * jax.lax.rsqrt(
        jnp.maximum(jnp.sum(k32 * k32, axis=1, keepdims=True), _EPS2))
    lp = jnp.sum(qn * kn, axis=1, keepdims=True) * inv_T       # (N, 1) == logits[:, 0]
    qs = qn * inv_T                                             # 1/||q|| and 1/T folded

    # ---- tiling / grid -----------------------------------------------------
    queue_itemsize = jnp.dtype(queue.dtype).itemsize
    if tile_k is None:
        tile_k = _auto_tile_k(N, C, K, queue_itemsize, tile_budget_bytes)
    tk = _normalize_tile_k(tile_k, K)
    num_kb = pl.cdiv(K, tk)
    G = num_k_splits if num_kb >= num_k_splits else 1           # v7x: one slice per TC
    kb_per_core = pl.cdiv(num_kb, G)

    # Constant-max shift is safe unless T is tiny enough that exp(-2/T) flushes to 0.
    use_online_max = inv_T > 43.0

    def queue_index_map(c, kb):
        g = c * kb_per_core + kb
        return (0, jnp.minimum(g, num_kb - 1))   # clamp fully-OOB tiles (masked in-kernel)

    kernel = functools.partial(_contrast_all_kernel, inv_T=inv_T, K=int(K),
                               tk=tk, use_online_max=use_online_max)

    est_vmem = (2 * C * tk * queue_itemsize      # double-buffered queue tile
                + 6 * N * tk * 4                 # (N, tk) f32 temporaries
                + 2 * N * C * 4                  # resident qs (double-buffered)
                + 4 * G * N * 4)                 # partial outputs
    vmem_limit = int(min(64 << 20, max(32 << 20, est_vmem + (8 << 20))))

    cost = pl.CostEstimate(
        flops=2 * N * C * K + 8 * N * K,
        transcendentals=N * K,
        bytes_accessed=C * K * queue_itemsize + N * C * 4 + 2 * G * N * 4)

    s_part, m_part = pl.pallas_call(
        kernel,
        out_shape=(jax.ShapeDtypeStruct((G, N, 1), jnp.float32),
                   jax.ShapeDtypeStruct((G, N, 1), jnp.float32)),
        grid_spec=pltpu.PrefetchScalarGridSpec(
            num_scalar_prefetch=0,
            grid=(G, kb_per_core),
            in_specs=[
                pl.BlockSpec((N, C), lambda c, kb: (0, 0)),     # qs, resident
                pl.BlockSpec((C, tk), queue_index_map),         # queue, streamed
            ],
            out_specs=[
                pl.BlockSpec((1, N, 1), lambda c, kb: (c, 0, 0)),   # partial sum-exp
                pl.BlockSpec((1, N, 1), lambda c, kb: (c, 0, 0)),   # partial shift/max
            ],
        ),
        compiler_params=pltpu.CompilerParams(
            dimension_semantics=("parallel", "arbitrary"),
            vmem_limit_bytes=vmem_limit),
        cost_estimate=cost,
    )(qs, queue)

    # ---- combine per-core partials with the positive logit (XLA side) ------
    m_tot = jnp.maximum(jnp.max(m_part, axis=0), lp)                      # (N, 1)
    s_tot = jnp.sum(s_part * jnp.exp(m_part - m_tot), axis=0) + jnp.exp(lp - m_tot)
    lse = m_tot + jnp.log(s_tot)                                          # logsumexp(logits)
    return jnp.mean(lse - lp)                                             # CE with label 0


def _reference(q, k, queue, T):
    """Pure-JAX reference (full-precision matmul) for correctness checking."""
    if queue.ndim > 2:
        queue = queue[-1, :, :]
    qn = q / jnp.maximum(jnp.linalg.norm(q, axis=1, keepdims=True), _EPS)
    kn = k / jnp.maximum(jnp.linalg.norm(k, axis=1, keepdims=True), _EPS)
    queuen = queue / jnp.maximum(jnp.linalg.norm(queue, axis=0, keepdims=True), _EPS)
    l_pos = jnp.sum(qn * kn, axis=1, keepdims=True)
    l_neg = jnp.dot(qn, queuen, precision=jax.lax.Precision.HIGHEST)
    logits = jnp.concatenate([l_pos, l_neg], axis=1) / T
    lse = jax.scipy.special.logsumexp(logits, axis=1)
    return jnp.mean(lse - logits[:, 0])


if __name__ == "__main__":
    # Small MoCo-like shapes: batch N=8, feature dim C=32, queue length K=400
    # (K deliberately NOT a multiple of the tile so the ragged-tail mask is exercised).
    N, C, K = 8, 32, 400
    T = 0.07

    key = jax.random.PRNGKey(0)
    kq, kk, kqueue = jax.random.split(key, 3)
    q = jax.random.normal(kq, (N, C), dtype=jnp.float32)
    k = jax.random.normal(kk, (N, C), dtype=jnp.float32)
    queue = jax.random.normal(kqueue, (C, K), dtype=jnp.float32)

    ref = _reference(q, k, queue, T)

    # 1) Small tile -> 4 K-tiles (last one ragged), 2-way parallel K split.
    loss = jax.block_until_ready(contrast_all_loss((q,), k, queue, T=T, tile_k=128))
    assert jnp.allclose(loss, ref, rtol=1e-3, atol=5e-3), (loss, ref)

    # 2) Auto tiling path (collapses to a single full-K tile at this small size).
    loss2 = jax.block_until_ready(contrast_all_loss((q,), k, queue, T=T))
    assert jnp.allclose(loss2, ref, rtol=1e-3, atol=5e-3), (loss2, ref)

    print("KERNEL_OK")
</pallas_src>

<mosaic_0001>
module attributes {stable_mosaic.version = 11 : i64} {
  func.func @_contrast_all_kernel(%arg0: i32, %arg1: i32, %arg2: memref<8x32xf32, #tpu.memory_space<vmem>>, %arg3: memref<32x128xf32, #tpu.memory_space<vmem>>, %arg4: memref<1x8x1xf32, #tpu.memory_space<vmem>>, %arg5: memref<1x8x1xf32, #tpu.memory_space<vmem>>) attributes {dimension_semantics = [#tpu.dimension_semantics<parallel>, #tpu.dimension_semantics<arbitrary>], iteration_bounds = array<i64: 2, 2>, scalar_prefetch = 0 : i64, scratch_operands = 0 : i64, tpu.core_type = #tpu.core_type<tc>, window_params = [{pipeline_mode = #tpu.pipeline_mode<synchronous>, transform_indices = @transform_0, window_bounds = array<i64: 8, 32>}, {transform_indices = @transform_1, window_bounds = array<i64: 32, 128>}, {transform_indices = @transform_2, window_bounds = array<i64: 1, 8, 1>}, {transform_indices = @transform_3, window_bounds = array<i64: 1, 8, 1>}]} {
    %c2_i32 = arith.constant 2 : i32
    %0 = arith.muli %arg0, %c2_i32 : i32
    %1 = arith.addi %0, %arg1 : i32
    %c0_i32 = arith.constant 0 : i32
    %2 = arith.cmpi eq, %arg1, %c0_i32 : i32
    %3 = arith.extui %2 : i1 to i32
    %c0_i32_0 = arith.constant 0 : i32
    %4 = arith.cmpi ne, %3, %c0_i32_0 : i32
    scf.if %4 {
      %cst_15 = arith.constant 0.000000e+00 : f32
      %35 = vector.broadcast %cst_15 : f32 to vector<1x8x1xf32>
      %c0_16 = arith.constant 0 : index
      %c0_17 = arith.constant 0 : index
      %c0_18 = arith.constant 0 : index
      %36 = vector.load %arg4[%c0_16, %c0_17, %c0_18] : memref<1x8x1xf32, #tpu.memory_space<vmem>>, vector<1x8x1xf32>
      tpu.vector_store %arg4[%c0_16, %c0_17, %c0_18], %35 {strides = array<i32>} : memref<1x8x1xf32, #tpu.memory_space<vmem>>, vector<1x8x1xf32>,
      %cst_19 = arith.constant 14.2857141 : f32
      %37 = vector.broadcast %cst_19 : f32 to vector<1x8x1xf32>
      %c0_20 = arith.constant 0 : index
      %c0_21 = arith.constant 0 : index
      %c0_22 = arith.constant 0 : index
      %38 = vector.load %arg5[%c0_20, %c0_21, %c0_22] : memref<1x8x1xf32, #tpu.memory_space<vmem>>, vector<1x8x1xf32>
      tpu.vector_store %arg5[%c0_20, %c0_21, %c0_22], %37 {strides = array<i32>} : memref<1x8x1xf32, #tpu.memory_space<vmem>>, vector<1x8x1xf32>,
    } else {
    }
    %c0 = arith.constant 0 : index
    %c0_1 = arith.constant 0 : index
    %5 = vector.load %arg3[%c0, %c0_1] : memref<32x128xf32, #tpu.memory_space<vmem>>, vector<32x128xf32>
    %6 = arith.mulf %5, %5 : vector<32x128xf32>
    %cst = arith.constant dense<0.000000e+00> : vector<128xf32>
    %7 = vector.multi_reduction <add>, %6, %cst [0] : vector<32x128xf32> to vector<128xf32>
    %8 = vector.shape_cast %7 : vector<128xf32> to vector<1x128xf32>
    %cst_2 = arith.constant 1.000000e-24 : f32
    %9 = vector.broadcast %cst_2 : f32 to vector<1x128xf32>
    %10 = arith.maximumf %8, %9 : vector<1x128xf32>
    %11 = math.rsqrt %10 : vector<1x128xf32>
    %c0_3 = arith.constant 0 : index
    %c0_4 = arith.constant 0 : index
    %12 = vector.load %arg2[%c0_3, %c0_4] : memref<8x32xf32, #tpu.memory_space<vmem>>, vector<8x32xf32>
    %cst_5 = arith.constant dense<0.000000e+00> : vector<8x128xf32>
    %13 = tpu.matmul %12, %5, %cst_5 {dimension_numbers = #tpu.dot_dimension_numbers<[1], [0], [0], [1], [0, 0, 1, 1], [], []>} : vector<8x32xf32>, vector<32x128xf32>, vector<8x128xf32> -> vector<8x128xf32>
    %14 = vector.broadcast %11 : vector<1x128xf32> to vector<8x128xf32>
    %15 = arith.mulf %13, %14 : vector<8x128xf32>
    %c128_i32 = arith.constant 128 : i32
    %16 = arith.muli %1, %c128_i32 : i32
    %17 = tpu.iota {dimensions = array<i32: 1>} : vector<8x128xi32>
    %18 = vector.broadcast %16 : i32 to vector<8x128xi32>
    %19 = arith.addi %18, %17 : vector<8x128xi32>
    %c400_i32 = arith.constant 400 : i32
    %20 = vector.broadcast %c400_i32 : i32 to vector<8x128xi32>
    %21 = arith.cmpi slt, %19, %20 : vector<8x128xi32>
    %cst_6 = arith.constant -1.000000e+30 : f32
    %22 = vector.broadcast %cst_6 : f32 to vector<8x128xf32>
    %23 = arith.select %21, %15, %22 : vector<8x128xi1>, vector<8x128xf32>
    %c0_7 = arith.constant 0 : index
    %c0_8 = arith.constant 0 : index
    %c0_9 = arith.constant 0 : index
    %24 = vector.load %arg4[%c0_7, %c0_8, %c0_9] : memref<1x8x1xf32, #tpu.memory_space<vmem>>, vector<1x8x1xf32>
    %25 = vector.shape_cast %24 : vector<1x8x1xf32> to vector<8x1xf32>
    %cst_10 = arith.constant 14.2857141 : f32
    %26 = vector.broadcast %cst_10 : f32 to vector<8x128xf32>
    %27 = arith.subf %23, %26 : vector<8x128xf32>
    %28 = math.exp %27 : vector<8x128xf32>
    %cst_11 = arith.constant dense<0.000000e+00> : vector<8xf32>
    %29 = vector.multi_reduction <add>, %28, %cst_11 [1] : vector<8x128xf32> to vector<8xf32>
    %30 = vector.shape_cast %29 : vector<8xf32> to vector<8x1xf32>
    %31 = arith.addf %25, %30 : vector<8x1xf32>
    %c0_12 = arith.constant 0 : index
    %c0_13 = arith.constant 0 : index
    %c0_14 = arith.constant 0 : index
    %32 = vector.load %arg4[%c0_12, %c0_13, %c0_14] : memref<1x8x1xf32, #tpu.memory_space<vmem>>, vector<1x8x1xf32>
    %33 = vector.shape_cast %32 : vector<1x8x1xf32> to vector<8x1xf32>
    %34 = vector.shape_cast %31 : vector<8x1xf32> to vector<1x8x1xf32>
    tpu.vector_store %arg4[%c0_12, %c0_13, %c0_14], %34 {strides = array<i32>} : memref<1x8x1xf32, #tpu.memory_space<vmem>>, vector<1x8x1xf32>,
    return
  }
  func.func @transform_0(%arg0: i32, %arg1: i32) -> (i32, i32) {
    %c0_i32 = arith.constant 0 : i32
    %c0_i32_0 = arith.constant 0 : i32
    %c0_i32_1 = arith.constant 0 : i32
    return %c0_i32, %c0_i32_0 : i32, i32
  }
  func.func @transform_1(%arg0: i32, %arg1: i32) -> (i32, i32) {
    %c2_i32 = arith.constant 2 : i32
    %0 = arith.muli %arg0, %c2_i32 : i32
    %1 = arith.addi %0, %arg1 : i32
    %c3_i32 = arith.constant 3 : i32
    %2 = arith.minsi %1, %c3_i32 : i32
    %c0_i32 = arith.constant 0 : i32
    %c0_i32_0 = arith.constant 0 : i32
    return %c0_i32, %2 : i32, i32
  }
  func.func @transform_2(%arg0: i32, %arg1: i32) -> (i32, i32, i32) {
    %c0_i32 = arith.constant 0 : i32
    %c0_i32_0 = arith.constant 0 : i32
    %c0_i32_1 = arith.constant 0 : i32
    return %arg0, %c0_i32, %c0_i32_0 : i32, i32, i32
  }
  func.func @transform_3(%arg0: i32, %arg1: i32) -> (i32, i32, i32) {
    %c0_i32 = arith.constant 0 : i32
    %c0_i32_0 = arith.constant 0 : i32
    %c0_i32_1 = arith.constant 0 : i32
    return %arg0, %c0_i32, %c0_i32_0 : i32, i32, i32
  }
}

</mosaic_0001>

<bundles_post_ra>
// kernel: tpu_custom_call.1
= control target key start
LH: loop header
LB: loop body
LE: loop exit
PB: predicated region body
PF: predicated region fallthrough
CT: control target
= control target key end

     0   :  { %9 = vsyncpa [#allocation3], 0  ;;  %s978_s0 = inlined_call_operand.hbm [shape: f32[8,32], index: 0, kind: input, shape index: {}]   ;;  %s979_s1 = inlined_call_operand.hbm [shape: f32[32,400], index: 1, kind: input, shape index: {}]   ;;  %s980_s2 = inlined_call_operand.vmem [shape: f32[2,8,1], index: 2, kind: output, shape index: {0}]   ;;  %s981_s3 = inlined_call_operand.vmem [shape: f32[2,8,1], index: 3, kind: output, shape index: {1}]  }
   0x1   :  { %10 = vsyncpa [#allocation5], 0 }
   0x2   :  { %12 = vsyncpa [#allocation5 + $0x1], 0  ;;  %s777_s12 = smov 0   ;;  %s779_s13 = smov 0  }
   0x3   :  { %s781_s14 = smov 0   ;;  %s783_s15 = smov 0  }
   0x4   :  { %s785_s16 = smov 0   ;;  %s787_s17 = smov 0  }
   0x5   :  { %s789_s18 = smov 0   ;;  %s791_s19 = smov 0  }
   0x6 LB: > { %s479_s20 = sadd.s32 4294967295, %s745_s19   ;;  %p73_p0 = scmp.ne.s32.totalorder %s725_s14, %s721_s13  ;;  %s745_s19 = sphi %s791_s19, %s18_s19   ;;  %s741_s18 = sphi %s789_s18, %s1004_s18   ;;  %s737_s17 = sphi %s787_s17, %s1003_s17   ;;  %s733_s16 = sphi %s785_s16, %s1002_s16   ;;  %s729_s15 = sphi %s783_s15, %s1001_s15   ;;  %s725_s14 = sphi %s781_s14, %s1000_s14   ;;  %s721_s13 = sphi %s779_s13, %s999_s13   ;;  %s717_s12 = sphi %s777_s12, %s998_s12  }
   0x7   : > { %p74_p1 = scmp.eq.s32.totalorder %s745_s19, 0  ;;  %p79_p2 = scmp.ne.s32.totalorder %s721_s13, %s717_s12 }
   0x8   : > { %p820_p3 = scmp.eq.s32.totalorder %s479_s20, 0  ;;  %p483_p5 = scmp.ge.s32.totalorder %s745_s19, 1 }
   0x9   : > { %p75_p4 = por %p74_p1, %p73_p0  ;;  %p142_p7 = scmp.lt.s32.totalorder %s745_s19, 5 }
   0xa   : > { %s987_s21 = scalar_select %p820_p3, 1, 0 }
   0xb   : > { %p827_p6 = por %p820_p3, %p79_p2  ;;  %p832_p8 = pnand %p483_p5, %p142_p7 }
   0xc   : > { %s747_s24 = smov [#allocation2]   ;;  %p538_p10 = scmp.lt.s32.totalorder %s745_s19, 4 }
   0xd   : > { %s988_s22 = scalar_select %p827_p6, 1, 0 }
   0xe   : > { %s989_s23 = scalar_select %p832_p8, 1, 0 }
   0xf   : > { %s155_s25 = sshll.u32 %s747_s24, 4  ;;  %p529_p9 = pneg %p832_p8  ;;  %s156_s25 = int_to_ptr.vmem [resolvable:$true] %s155_s25 }
  0x10   : > { %p845_p12 = pnand %p538_p10, %p75_p4  ;;  %s617_s30 = scalar_lea.hbm %s978_s0, 128 }
  0x11   : > { %p841_p11 = pnand %p529_p9, %p820_p3  ;;  %p618_p13 = scmp.ne.s32.totalorder %s978_s0, %s617_s30 }
  0x12   : > { %s991_s27 = scalar_select %p845_p12, 1, 0 }
  0x13   : > { %p619_p0 = pneg %p841_p11  ;;  %p624_p5 = scmp.lt.u32.totalorder %s617_s30, %s978_s0 }
  0x15   : > { %p620_p1 = pnand %p619_p0, %p618_p13 }
  0x17   : > { %p621_p2 = pneg %p620_p1 }
  0x19   : > { %p626_p4 = pnand %p624_p5, %p621_p2 }
  0x1b   : > { %629 = shalt.err (!%p626_p4)
}
  0x1c   : > { %s630_s8 = scalar_lea.vmem %s156_s25, 128  ;;  %p638_p6 = scmp.lt.s32.totalorder %s156_s25, %s156_s25 }
  0x1d   : > { %p631_p7 = scmp.ne.s32.totalorder %s156_s25, %s630_s8  ;;  %p639_p3 = scmp.lt.s32.totalorder %s630_s8, %s630_s8 }
  0x1f   : > { %p633_p9 = pnand %p631_p7, %p619_p0  ;;  %p640_p8 = por %p639_p3, %p638_p6 }
  0x21   : > { %p634_p10 = pneg %p633_p9 }
  0x23   : > { %p641_p12 = pnand %p640_p8, %p634_p10 }
  0x25   : > { %644 = shalt.err (!%p641_p12)
}
  0x26   : > { %532 = dma.hbm_to_vmem [thread:$0]  (!%p841_p11), %s978_s0, 128, %s156_s25, [#allocation3]  }
  0x27   : > { %s27_s11 = sadd.s32 1, %s737_s17  ;;  %s30_s12 = sadd.s32 1, %s741_s18 }
  0x28   : > { %p28_p13 = scmp.ge.s32.totalorder %s27_s11, 2  ;;  %s481_s20 = sshll.u32 %s741_s18, 1 }
  0x29   : > { %s56_s24 = sadd.s32 %s737_s17, %s481_s20  ;;  %s166_s28 = sand.u32 1, %s725_s14  }
  0x2a   : > { %s1006_s11 = smov (%p28_p13, %s27_s11), 0  ;;  %s1008_s12 = smov (!%p28_p13, %s30_s12), %s741_s18 }
  0x2b   : > { %p57_p3 = scmp.lt.s32.totalorder %s56_s24, 3  ;;  %p32_p6 = scmp.ge.s32.totalorder %s1008_s12, 2 }
  0x2c   : > { %s486_s26 = sshll.u32 %s166_s28, 5  ;;  %s66_s9 = sadd.s32 1, %s725_s14 }
  0x2d   : > { %s1010_s24 = smov (!%p57_p3, %s56_s24), 3  ;;  %s1012_s12 = smov (%p32_p6, %s1008_s12), 0 }
  0x2e   : > { %s488_s25 = sshll.u32 %s1010_s24, 7  ;;  %s482_s29 = sshll.u32 %s1012_s12, 1 }
  0x2f   : > { %s60_s30 = sadd.s32 %s482_s29, %s1006_s11  ;;  %s170_s4 = scalar_lea.vmem [#allocation4], %s486_s26 }
  0x30   : > { %s180_s5 = sshll.u32 %s170_s4, 4  ;;  %p61_p8 = scmp.lt.s32.totalorder %s60_s30, 3  ;;  %s882_s5 = int_to_ptr.vmem [resolvable:$true] %s180_s5 }
  0x31   : > { %s880_s8 = scalar_lea.hbm %s979_s1, %s488_s25  ;;  %s889_s26 = scalar_lea.sflag [#allocation5], %s166_s28 }
  0x32   : > { %s1014_s30 = smov (!%p61_p8, %s60_s30), 3  ;;  %s645_s29 = scalar_lea.hbm %s880_s8, 512 }
  0x33   : > { %s63_s10 = ssub.s32 %s1010_s24, %s1014_s30  ;;  %p646_p12 = scmp.ne.s32.totalorder %s880_s8, %s645_s29 }
  0x34   : > { %p885_p11 = scmp.eq.s32.totalorder %s63_s10, 0  ;;  %p993_p0 = scmp.ne.s32.totalorder %s991_s27, 0 }
  0x35   : > { %s650_s6 = scalar_lea.hbm %s979_s1, 2048  ;;  %p651_p4 = scmp.lt.u32.totalorder %s880_s8, %s979_s1 }
  0x36   : > { %p647_p1 = pneg %p993_p0  ;;  %p652_p7 = scmp.lt.u32.totalorder %s650_s6, %s645_s29 }
  0x37   : > { %p654_p10 = scmp.lt.u32.totalorder %s645_s29, %s880_s8 }
  0x38   : > { %p648_p2 = pnand %p647_p1, %p646_p12  ;;  %p653_p9 = por %p652_p7, %p651_p4 }
  0x3a   : > { %p649_p5 = pneg %p648_p2  ;;  %p655_p13 = por %p654_p10, %p653_p9 }
  0x3c   : > { %p656_p3 = pnand %p655_p13, %p649_p5 }
  0x3e   : > { %659 = shalt.err (!%p656_p3)
}
  0x3f   : > { %s660_s28 = scalar_lea.vmem %s882_s5, 512  ;;  %s748_s30 = smov [#allocation4]  }
  0x40   : > { %p661_p6 = scmp.ne.s32.totalorder %s882_s5, %s660_s28  ;;  %s665_s10 = sshll.u32 %s748_s30, 4  ;;  %s666_s10 = int_to_ptr.vmem [resolvable:$false] %s665_s10 }
  0x41   : > { %s667_s25 = scalar_lea.vmem %s666_s10, 1024  ;;  %p668_p2 = scmp.lt.s32.totalorder %s882_s5, %s666_s10 }
  0x42   : > { %p663_p8 = pnand %p661_p6, %p647_p1  ;;  %p669_p4 = scmp.lt.s32.totalorder %s667_s25, %s660_s28 }
  0x44   : > { %p664_p12 = pneg %p663_p8  ;;  %p670_p7 = por %p669_p4, %p668_p2 }
  0x46   : > { %p671_p9 = pnand %p670_p7, %p664_p12 }
  0x48   : > { %674 = shalt.err (!%p671_p9)
}
  0x49   : > { %s749_s29 = smov 512   ;;  %s750_s4 = smov 128  }
  0x4a   : > { %s751_s6 = smov 8   ;;  %p994_p1 = scmp.ne.s32.totalorder %s989_s23, 0 }
  0x4b   : > { %536 = dma.hbm_to_vmem [thread:$0]  (!%p993_p0), %s880_s8, 512, %s882_s5, %s889_s26, %s749_s29, %s750_s4, %s751_s6  }
  0x4c   : > { %s922_s7 = scalar_select %p885_p11, %s725_s14, %s66_s9  }
  0x4d   : > { %192 = sbr.rel (%p994_p1) target bundleno = 484 (0x1e4), region = 28  ;;  %p995_p5 = scmp.ne.s32.totalorder (!%p994_p1), %s987_s21, 0 }
  0x54   : > { %708 = dma.done.wait (%p995_p5), [#allocation3], 128  }
  0x55   : > { %710 = vsyncadd (%p995_p5), [#allocation3], 4294967168  ;;  %s198_s24 = sand.u32 1, %s721_s13   ;;  %p996_p0 = scmp.ne.s32.totalorder %s988_s22, 0 }
  0x56   : > { %s491_s28 = sshll.u32 %s198_s24, 5  ;;  %s199_s30 = scalar_lea.sflag [#allocation5], %s198_s24 }
  0x57   : > { %s202_s27 = scalar_lea.vmem [#allocation4], %s491_s28 }
  0x58   : > { %712 = dma.done.wait (%p996_p0), %s199_s30, 512  }
  0x59   : > { %714 = vsyncadd (%p996_p0), %s199_s30, 4294966784  ;;  %p232_p11 = scmp.lt.s32.totalorder %s733_s16, 1  ;;  %s494_s23 = sshll.u32 %s733_s16, 1 }
  0x5a   : > { %s938_s5 = sadd.s32 %s729_s15, %s494_s23  ;;  %p495_p10 = scmp.ne.s32.totalorder %s729_s15, 0 }
  0x5b   : > { %s1016_s16 = smov (!%p232_p11, %s733_s16), 1  ;;  %vm246_vm0 = vcmask (!%p495_p10), 7168   ;;  %v752_v0 = vmov (!%p495_p10), 0.0   ;;  %v753_v1 = vmov (!%p495_p10), 14.285714  }
  0x5c   : > { %s492_s21 = sshll.u32 %s1016_s16, 3  ;;  %245 = sbr.rel (%p495_p10) target bundleno = 99 (0x63), region = 40 }
  0x5d   : > { %s944_s20 = scalar_lea.vmem %s980_s2, %s492_s21  ;;  %s239_s22 = scalar_lea.vmem %s981_s3, %s492_s21 }
  0x5e   : > { %247 = vst.msk [vmem:[%s944_s20] sm:$0xff] (!%p495_p10), %vm246_vm0, %v752_v0  ;;  %248 = vst.msk [vmem:[%s239_s22] sm:$0xff] (!%p495_p10), %vm246_vm0, %v753_v1 }
  0x63 PF: > { %v249_v2 = vld [vmem:[%s202_s27] sm:$0xff]  ;;  %v250_v3 = vld [vmem:[%s202_s27 + $0x8] sm:$0xff]  ;;  %v251_v4 = vld [vmem:[%s202_s27 + $0x10] sm:$0xff]  ;;  %v754_v5 = vmov 0.0|0.0   ;;  %vm755_vm1 = vmmov 0   ;;  %v756_v11 = vmov 0.0   ;;  %v345_v25 = vlaneseq }
  0x64   : > { %517 = vmatprep.subr.bf16.mxu0 %v754_v5  ;;  %v253_v6 = vmul.f32 %v249_v2, %v249_v2  ;;  %v254_v7 = vmul.f32 %v250_v3, %v250_v3  ;;  %v518_v8 = vpack.c.bf16 %v250_v3, %v249_v2  ;;  %v252_v9 = vld [vmem:[%s202_s27 + $0x18] sm:$0xff]  ;;  %v255_v10 = vmul.f32 %v251_v4, %v251_v4  ;;  %s497_s15 = sshll.u32 %s938_s5, 7 }
  0x65   : > { %514 = vmatprep.mubr.msk.f32.mxu0 %vm755_vm1, %v756_v11  ;;  %v256_v13 = vmul.f32 %v252_v9, %v252_v9  ;;  %v521_v14 = vpack.c.bf16 %v252_v9, %v251_v4  ;;  %v268_v17 = vld [vmem:[#allocation2] sm:$0xff]  ;;  %vm269_vm2 = vcmask 261120   ;;  %v346_v26 = vand.u32 127, %v345_v25 }
  0x66   : > { %v257_v12 = vadd.f32 %v254_v7, %v253_v6  ;;  %519 = vmatpush3.bf16.msra.mxu0 %v518_v8  ;;  %v347_v27 = vstv %s497_s15  ;;  %v351_v37 = vld [vmem:[%s944_s20] sm:$0xff]  ;;  %vm358_vm4 = vcmask 7168  }
  0x67   : > { %520 = vmatprep.subr.bf16.mxu0 %v754_v5  ;;  %v348_v28 = vadd.s32 %v347_v27, %v346_v26 }
  0x68   : > { %v258_v15 = vadd.f32 %v257_v12, %v255_v10 }
  0x69   : > { %vm349_vm3 = vcmp.lt.s32.totalorder %v348_v28, 400 }
  0x6a   : > { %v259_v16 = vadd.f32 %v258_v15, %v256_v13  ;;  %522 = vmatpush3.bf16.msra.mxu0 %v521_v14 }
  0x6c   : > { %v260_v18 = vrot.slane %v259_v16, 4 }
  0x6d   : > { %515 = vmatmul.mubr.msk.f32.vlgmr.msra.gmra.mrb[0].mxu0 %vm269_vm2, %v268_v17 }
  0x6e   : > { %v261_v19 = vadd.f32 %v260_v18, %v259_v16 }
  0x70   : > { %v262_v20 = vrot.slane %v261_v19, 2 }
  0x72   : > { %v263_v21 = vadd.f32 %v262_v20, %v261_v19 }
  0x74   : > { %v264_v22 = vrot.slane %v263_v21, 1 }
  0x76   : > { %v265_v23 = vadd.f32 %v264_v22, %v263_v21 }
  0x78   : > { %v266_v24 = vmax.f32 %v265_v23, 1e-24 }
  0x7a   : > { %613 = vrsqrt.f32 %v266_v24 }
  0x84   : > { %v614_v29 = vpop.eup %613 }
 0x140   : > { %v339_v30 = vpop.f32.mrb[0].mxu0 }
 0x141   : > { %v343_v31 = vmul.f32 %v614_v29, %v339_v30  ;;  %v516_v32 = vpop.f32.mrb[1].mxu0 }
 0x143   : > { %v350_v33 = vsel %vm349_vm3, %v343_v31, -1e+30 }
 0x144   : > { %v498_v34 = vadd.f32 -14.285714, %v350_v33 }
 0x146   : > { %v353_v35 = vmul.f32 1.442695, %v498_v34 }
 0x148   : > { %615 = vpow2.f32 %v353_v35 }
 0x152   : > { %v616_v36 = vpop.eup %615 }
 0x153   : > { %355 = vadd.xlane.f32.xlu0 %v616_v36 }
 0x1e0   : > { %v356_v38 = vpop.xlane.xlu0 %355 }
 0x1e1   : > { %v357_v39 = vadd.f32 %v356_v38, %v351_v37 }
 0x1e3   : > { %359 = vst.msk [vmem:[%s944_s20] sm:$0xff] %vm358_vm4, %v357_v39 }
 0x1e4 PF: > { %s18_s19 = sadd.s32 1, %s745_s19   ;;  %s997_s25 = smov %s1012_s12 }
 0x1e5   : > { %p15_p13 = scmp.ge.s32.totalorder %s18_s19, 6   ;;  %s998_s12 = smov %s721_s13 }
 0x1e6   : > { %s999_s13 = smov %s725_s14  ;;  %s1000_s14 = smov %s922_s7 }
 0x1e7   : > { %s1001_s15 = smov %s737_s17  ;;  %s1002_s16 = smov %s741_s18 }
 0x1e8   : > { %s1003_s17 = smov %s1006_s11  ;;  %s1004_s18 = smov %s997_s25 }
 0x1e9   :  { %17 = sbr.rel (!%p15_p13) target bundleno = 6 (0x6), region = 89 }
 0x1f0   :  { %393 = vsyncpa [#allocation3], 1 }
 0x1f1   :  { %395 = vsyncpa [#allocation3 + $0x1], 1 }
 0x1f2   :  { %396 = vsyncpa [#allocation5], 1 }
 0x1f3   :  { %398 = vsyncpa [#allocation5 + $0x1], 1 }

</bundles_post_ra>
